<compile_context>
chip_gen: v6e
topology: v6e:2x2x1
jax: 0.10.0
libtpu: 0.0.40
codegen_flags: <defaults>
</compile_context>

<pallas_src>
import jax
import jax.numpy as jnp
from jax.experimental import pallas as pl
from jax.experimental.pallas import tpu as pltpu

LN_EPS = 1e-12             # BERT default layer_norm_eps
_INV_SQRT2 = 0.7071067811865476
_BIG_NEG = -1e9            # bias for padded vocab columns (inert under softmax)


def _round_up(x, m):
    return (x + m - 1) // m * m


def _erf(x):
    """Abramowitz & Stegun 7.1.26 polynomial erf, |err| <= 1.5e-7 (f32).

    Uses only EUP exp + VPU mul/add/div/select, so it lowers cleanly in Mosaic
    without depending on an erf primitive."""
    a1, a2, a3, a4, a5 = 0.254829592, -0.284496736, 1.421413741, -1.453152027, 1.061405429
    p = 0.3275911
    ax = jnp.abs(x)
    t = 1.0 / (1.0 + p * ax)
    poly = ((((a5 * t + a4) * t + a3) * t + a2) * t + a1) * t
    y = 1.0 - poly * jnp.exp(-(ax * ax))
    return jnp.where(x < 0.0, -y, y)


# -----------------------------------------------------------------------------
# Kernel 1: BertPredictionHeadTransform  (Linear(H,H) + GELU + LayerNorm)
# -----------------------------------------------------------------------------
def _transform_kernel(x_ref, w_ref, b_ref, gamma_ref, beta_ref, o_ref):
    # f32 activations arrive from HBM, cast to bf16 at the MXU input (saves a
    # separate wrapper-side cast pass over (M, H)); accumulate in f32.
    h = jnp.dot(x_ref[...].astype(jnp.bfloat16), w_ref[...],
                preferred_element_type=jnp.float32)
    h = h + b_ref[...]

    # Exact erf GELU (HF hidden_act="gelu"); elementwise math kept in f32.
    # TODO(synk): on v6e/v7x the GELU polynomial could run in bf16 (bf16
    # VPU/EUP) for ~2x elementwise throughput; kept f32 for v5e portability.
    h = 0.5 * h * (1.0 + _erf(h * _INV_SQRT2))

    # One-pass LayerNorm over the hidden axis: var = E[h^2] - mu^2.
    mu = jnp.mean(h, axis=-1, keepdims=True)
    ms = jnp.mean(h * h, axis=-1, keepdims=True)
    hn = (h - mu) * jax.lax.rsqrt(ms - mu * mu + LN_EPS)
    o_ref[...] = (hn * gamma_ref[...] + beta_ref[...]).astype(o_ref.dtype)


# -----------------------------------------------------------------------------
# Kernel 2: decoder  (Linear(H, V) with added bias)
# -----------------------------------------------------------------------------
def _decoder_kernel(y_ref, w_ref, b_ref, o_ref):
    o_ref[...] = (
        jnp.dot(y_ref[...], w_ref[...], preferred_element_type=jnp.float32)
        + b_ref[...]
    ).astype(o_ref.dtype)


# -----------------------------------------------------------------------------
# One-time parameter packing (amortized to zero across calls)
# -----------------------------------------------------------------------------
def pack_params(params, *, vocab_pad=1024):
    """Transpose weights to (in, out), cast matmul weights to bf16, pad vocab.

    Padded vocab columns get a -1e9 bias so the padded logits are inert under
    a downstream softmax (allows skipping the post-kernel slice)."""
    H = params["dense_w"].shape[1]
    V = params["decoder_w"].shape[0]
    Vp = _round_up(V, vocab_pad)

    w2_t = params["decoder_w"].T.astype(jnp.bfloat16)            # (H, V)
    b2 = params["bias"].astype(jnp.float32)                      # (V,)
    if Vp != V:
        w2_t = jnp.pad(w2_t, ((0, 0), (0, Vp - V)))
        b2 = jnp.pad(b2, (0, Vp - V), constant_values=_BIG_NEG)

    return {
        "w1_t": params["dense_w"].T.astype(jnp.bfloat16),        # (H, H)
        "b1": params["dense_b"].astype(jnp.float32).reshape(1, H),
        "gamma": params["ln_gamma"].astype(jnp.float32).reshape(1, H),
        "beta": params["ln_beta"].astype(jnp.float32).reshape(1, H),
        "w2_t": w2_t,                                            # (H, Vp) bf16
        "b2": b2.reshape(1, Vp),                                 # (1, Vp) f32
        "vocab_size": V,
    }


# -----------------------------------------------------------------------------
# Forward
# -----------------------------------------------------------------------------
def bert_lm_prediction_head(hidden_states, packed, *, tm=512, tv=2048,
                            out_dtype=jnp.bfloat16, unpad=True,
                            vmem_budget=48 << 20):
    """hidden_states: [B, S, H] -> logits [B, S, V] in out_dtype (default bf16).

    With unpad=False the padded 2-D (Mp, Vp) logits are returned instead,
    avoiding the full-size slice copy (padded vocab columns sit near -1e9)."""
    B, S, H = hidden_states.shape
    V = packed["vocab_size"]
    Vp = packed["w2_t"].shape[1]
    M = B * S

    BF16, F32 = 2, 4
    ob = jnp.dtype(out_dtype).itemsize

    # ---- vocab tile: lane-dense, must divide the padded vocab ----
    tv = min(tv, Vp)
    while Vp % tv:
        tv //= 2
    assert tv % 128 == 0 and Vp % tv == 0, "vocab tile must divide padded vocab"

    def _dec_vmem(rows, cols):
        # double-buffered activation / weight / bias / output tiles
        return 2 * (rows * H * BF16 + H * cols * BF16 + cols * F32 + rows * cols * ob)

    # ---- row tiles ----
    # Transform is VPU/EUP-bound; 256 rows keeps its VMEM small and lets the
    # 'parallel' row axis split across TensorCores.
    tm_t = min(256, _round_up(M, 8))

    # Decoder rows: prefer an activation-resident decoder (whole (Mp, H) y
    # stays in VMEM, grid collapses to the vocab axis -> y and the decoder
    # weight are each streamed from HBM exactly once).  Fall back to row
    # tiling (vocab outer, rows inner: weight streamed once, y re-streamed
    # Vp/tv times) for large M.
    Mp_res = _round_up(M, tm_t)
    if _dec_vmem(Mp_res, tv) <= vmem_budget:
        Mp = Mp_res
        tm_d = Mp
    else:
        tm_d = max(tm_t, (min(tm, 1024) // tm_t) * tm_t)
        while tv > 256 and _dec_vmem(tm_d, tv) > vmem_budget:
            tv //= 2                      # keep v7x's 64 MiB VMEM safe
        Mp = _round_up(M, tm_d)
    assert Mp % tm_t == 0 and Mp % tm_d == 0

    x = hidden_states.reshape(M, H)       # stays f32; bf16 cast happens in-kernel
    if Mp != M:
        x = jnp.pad(x, ((0, Mp - M), (0, 0)))

    # ---- kernel 1: Linear(H,H) + GELU + LayerNorm ----
    t_vmem = (2 * (tm_t * H * F32         # x tile (f32)
                   + H * H * BF16         # dense weight
                   + 3 * H * F32          # bias / gamma / beta
                   + tm_t * H * BF16)     # y tile (bf16)
              + 4 * tm_t * H * F32)       # in-kernel f32 temporaries
    y = pl.pallas_call(
        _transform_kernel,
        out_shape=jax.ShapeDtypeStruct((Mp, H), jnp.bfloat16),
        grid_spec=pltpu.PrefetchScalarGridSpec(
            num_scalar_prefetch=0,
            grid=(Mp // tm_t,),
            in_specs=[
                pl.BlockSpec((tm_t, H), lambda i: (i, 0)),
                pl.BlockSpec((H, H), lambda i: (0, 0)),
                pl.BlockSpec((1, H), lambda i: (0, 0)),
                pl.BlockSpec((1, H), lambda i: (0, 0)),
                pl.BlockSpec((1, H), lambda i: (0, 0)),
            ],
            out_specs=pl.BlockSpec((tm_t, H), lambda i: (i, 0)),
        ),
        compiler_params=pltpu.CompilerParams(
            dimension_semantics=("parallel",),
            vmem_limit_bytes=int(t_vmem + (8 << 20)),
        ),
    )(x, packed["w1_t"], packed["b1"], packed["gamma"], packed["beta"])

    # ---- kernel 2: Linear(H, V) + bias ----
    # Vocab-outer / rows-inner grid: the (H, tv) weight tile index only changes
    # on the outer axis, so each weight tile is DMA'd from HBM exactly once.
    logits = pl.pallas_call(
        _decoder_kernel,
        out_shape=jax.ShapeDtypeStruct((Mp, Vp), out_dtype),
        grid_spec=pltpu.PrefetchScalarGridSpec(
            num_scalar_prefetch=0,
            grid=(Vp // tv, Mp // tm_d),
            in_specs=[
                pl.BlockSpec((tm_d, H), lambda j, i: (i, 0)),
                pl.BlockSpec((H, tv), lambda j, i: (0, j)),
                pl.BlockSpec((1, tv), lambda j, i: (0, j)),
            ],
            out_specs=pl.BlockSpec((tm_d, tv), lambda j, i: (i, j)),
        ),
        compiler_params=pltpu.CompilerParams(
            dimension_semantics=("parallel", "parallel"),
            vmem_limit_bytes=int(_dec_vmem(tm_d, tv) + (8 << 20)),
        ),
    )(y, packed["w2_t"], packed["b2"])

    if not unpad:
        return logits                      # (Mp, Vp); padded vocab cols ~= -1e9
    out = logits
    if Vp != V:
        out = out[:, :V]
    if Mp != M:
        out = out[:M]
    return out.reshape(B, S, V)


# -----------------------------------------------------------------------------
# Params / reference / test
# -----------------------------------------------------------------------------
def init_params(key, hidden_size, vocab_size):
    k1, k2, k3, k4 = jax.random.split(key, 4)
    std = 0.02  # BERT initializer_range
    return {
        "dense_w": jax.random.normal(k1, (hidden_size, hidden_size), jnp.float32) * std,
        "dense_b": jax.random.normal(k3, (hidden_size,), jnp.float32) * std,
        "ln_gamma": jnp.ones((hidden_size,), jnp.float32),
        "ln_beta": jnp.zeros((hidden_size,), jnp.float32),
        "decoder_w": jax.random.normal(k2, (vocab_size, hidden_size), jnp.float32) * std,
        "bias": jax.random.normal(k4, (vocab_size,), jnp.float32) * std,  # shared decoder.bias
    }


def _reference(hidden_states, params):
    """Pure-JAX reference mirroring the kernel's bf16 matmul-input quantization."""
    bf = lambda a: a.astype(jnp.bfloat16).astype(jnp.float32)
    h = bf(hidden_states) @ bf(params["dense_w"]).T + params["dense_b"]
    h = 0.5 * h * (1.0 + jax.scipy.special.erf(h / jnp.sqrt(2.0)))   # exact GELU
    mu = jnp.mean(h, axis=-1, keepdims=True)
    var = jnp.mean((h - mu) ** 2, axis=-1, keepdims=True)
    h = (h - mu) / jnp.sqrt(var + LN_EPS)
    h = h * params["ln_gamma"] + params["ln_beta"]
    return bf(h) @ bf(params["decoder_w"]).T + params["bias"]


if __name__ == "__main__":
    # Small shapes; VOCAB=500 deliberately not a multiple of the vocab tile to
    # exercise the padding path (real BERT vocab 30522 isn't aligned either).
    BATCH, SEQ, HIDDEN, VOCAB = 2, 8, 128, 500

    key = jax.random.PRNGKey(0)
    kx, kp = jax.random.split(key)
    hidden_states = jax.random.normal(kx, (BATCH, SEQ, HIDDEN), jnp.float32)
    params = init_params(kp, HIDDEN, VOCAB)
    packed = pack_params(params)          # one-time weight packing

    logits = bert_lm_prediction_head(hidden_states, packed)
    logits = jax.block_until_ready(logits)

    ref = _reference(hidden_states, params)
    assert logits.shape == (BATCH, SEQ, VOCAB)
    max_err = jnp.max(jnp.abs(logits.astype(jnp.float32) - ref))
    assert jnp.allclose(logits.astype(jnp.float32), ref, atol=2e-2, rtol=2e-2), (
        f"mismatch vs reference, max |err| = {max_err}")

    # Also exercise the no-slice path: padded vocab columns must be ~-1e9 so a
    # downstream softmax over the padded axis is unaffected.
    padded = bert_lm_prediction_head(hidden_states, packed, unpad=False)
    padded = jax.block_until_ready(padded)
    assert padded.shape[1] % 128 == 0
    assert bool(jnp.all(padded[:, VOCAB:].astype(jnp.float32) < -1e8))

    print("KERNEL_OK")
</pallas_src>

<mosaic_0001>
module attributes {stable_mosaic.version = 11 : i64} {
  func.func @_transform_kernel(%arg0: i32, %arg1: memref<16x128xf32, #tpu.memory_space<vmem>>, %arg2: memref<128x128xbf16, #tpu.memory_space<vmem>>, %arg3: memref<1x128xf32, #tpu.memory_space<vmem>>, %arg4: memref<1x128xf32, #tpu.memory_space<vmem>>, %arg5: memref<1x128xf32, #tpu.memory_space<vmem>>, %arg6: memref<16x128xbf16, #tpu.memory_space<vmem>>) attributes {dimension_semantics = [#tpu.dimension_semantics<parallel>], iteration_bounds = array<i64: 1>, scalar_prefetch = 0 : i64, scratch_operands = 0 : i64, tpu.core_type = #tpu.core_type<tc>, window_params = [{transform_indices = @transform_0, window_bounds = array<i64: 16, 128>}, {pipeline_mode = #tpu.pipeline_mode<synchronous>, transform_indices = @transform_1, window_bounds = array<i64: 128, 128>}, {pipeline_mode = #tpu.pipeline_mode<synchronous>, transform_indices = @transform_2, window_bounds = array<i64: 1, 128>}, {pipeline_mode = #tpu.pipeline_mode<synchronous>, transform_indices = @transform_3, window_bounds = array<i64: 1, 128>}, {pipeline_mode = #tpu.pipeline_mode<synchronous>, transform_indices = @transform_4, window_bounds = array<i64: 1, 128>}, {transform_indices = @transform_5, window_bounds = array<i64: 16, 128>}]} {
    %c0 = arith.constant 0 : index
    %c0_0 = arith.constant 0 : index
    %0 = vector.load %arg1[%c0, %c0_0] : memref<16x128xf32, #tpu.memory_space<vmem>>, vector<16x128xf32>
    %1 = arith.truncf %0 : vector<16x128xf32> to vector<16x128xbf16>
    %c0_1 = arith.constant 0 : index
    %c0_2 = arith.constant 0 : index
    %2 = vector.load %arg2[%c0_1, %c0_2] : memref<128x128xbf16, #tpu.memory_space<vmem>>, vector<128x128xbf16>
    %cst = arith.constant dense<0.000000e+00> : vector<16x128xf32>
    %3 = tpu.matmul %1, %2, %cst {dimension_numbers = #tpu.dot_dimension_numbers<[1], [0], [0], [1], [0, 0, 1, 1], [], []>} : vector<16x128xbf16>, vector<128x128xbf16>, vector<16x128xf32> -> vector<16x128xf32>
    %c0_3 = arith.constant 0 : index
    %c0_4 = arith.constant 0 : index
    %4 = vector.load %arg3[%c0_3, %c0_4] : memref<1x128xf32, #tpu.memory_space<vmem>>, vector<1x128xf32>
    %5 = vector.broadcast %4 : vector<1x128xf32> to vector<16x128xf32>
    %6 = arith.addf %3, %5 : vector<16x128xf32>
    %cst_5 = arith.constant 5.000000e-01 : f32
    %7 = vector.broadcast %cst_5 : f32 to vector<16x128xf32>
    %8 = arith.mulf %7, %6 : vector<16x128xf32>
    %cst_6 = arith.constant 0.707106769 : f32
    %9 = vector.broadcast %cst_6 : f32 to vector<16x128xf32>
    %10 = arith.mulf %6, %9 : vector<16x128xf32>
    %11 = math.absf %10 : vector<16x128xf32>
    %cst_7 = arith.constant 0.327591091 : f32
    %12 = vector.broadcast %cst_7 : f32 to vector<16x128xf32>
    %13 = arith.mulf %12, %11 : vector<16x128xf32>
    %cst_8 = arith.constant 1.000000e+00 : f32
    %14 = vector.broadcast %cst_8 : f32 to vector<16x128xf32>
    %15 = arith.addf %14, %13 : vector<16x128xf32>
    %cst_9 = arith.constant 1.000000e+00 : f32
    %16 = vector.broadcast %cst_9 : f32 to vector<16x128xf32>
    %17 = arith.divf %16, %15 : vector<16x128xf32>
    %cst_10 = arith.constant 1.06140542 : f32
    %18 = vector.broadcast %cst_10 : f32 to vector<16x128xf32>
    %19 = arith.mulf %18, %17 : vector<16x128xf32>
    %cst_11 = arith.constant -1.45315206 : f32
    %20 = vector.broadcast %cst_11 : f32 to vector<16x128xf32>
    %21 = arith.addf %19, %20 : vector<16x128xf32>
    %22 = arith.mulf %21, %17 : vector<16x128xf32>
    %cst_12 = arith.constant 1.42141378 : f32
    %23 = vector.broadcast %cst_12 : f32 to vector<16x128xf32>
    %24 = arith.addf %22, %23 : vector<16x128xf32>
    %25 = arith.mulf %24, %17 : vector<16x128xf32>
    %cst_13 = arith.constant -0.284496725 : f32
    %26 = vector.broadcast %cst_13 : f32 to vector<16x128xf32>
    %27 = arith.addf %25, %26 : vector<16x128xf32>
    %28 = arith.mulf %27, %17 : vector<16x128xf32>
    %cst_14 = arith.constant 0.254829586 : f32
    %29 = vector.broadcast %cst_14 : f32 to vector<16x128xf32>
    %30 = arith.addf %28, %29 : vector<16x128xf32>
    %31 = arith.mulf %30, %17 : vector<16x128xf32>
    %32 = arith.mulf %11, %11 : vector<16x128xf32>
    %cst_15 = arith.constant 0.000000e+00 : f32
    %33 = vector.broadcast %cst_15 : f32 to vector<16x128xf32>
    %34 = arith.subf %33, %32 : vector<16x128xf32>
    %35 = math.exp %34 : vector<16x128xf32>
    %36 = arith.mulf %31, %35 : vector<16x128xf32>
    %cst_16 = arith.constant 1.000000e+00 : f32
    %37 = vector.broadcast %cst_16 : f32 to vector<16x128xf32>
    %38 = arith.subf %37, %36 : vector<16x128xf32>
    %cst_17 = arith.constant 0.000000e+00 : f32
    %39 = vector.broadcast %cst_17 : f32 to vector<16x128xf32>
    %40 = arith.cmpf olt, %10, %39 : vector<16x128xf32>
    %cst_18 = arith.constant 0.000000e+00 : f32
    %41 = vector.broadcast %cst_18 : f32 to vector<16x128xf32>
    %42 = arith.subf %41, %38 : vector<16x128xf32>
    %43 = arith.select %40, %42, %38 : vector<16x128xi1>, vector<16x128xf32>
    %cst_19 = arith.constant 1.000000e+00 : f32
    %44 = vector.broadcast %cst_19 : f32 to vector<16x128xf32>
    %45 = arith.addf %44, %43 : vector<16x128xf32>
    %46 = arith.mulf %8, %45 : vector<16x128xf32>
    %cst_20 = arith.constant dense<0.000000e+00> : vector<16xf32>
    %47 = vector.multi_reduction <add>, %46, %cst_20 [1] : vector<16x128xf32> to vector<16xf32>
    %48 = vector.shape_cast %47 : vector<16xf32> to vector<16x1xf32>
    %cst_21 = arith.constant 1.280000e+02 : f32
    %49 = vector.broadcast %cst_21 : f32 to vector<16x1xf32>
    %50 = arith.divf %48, %49 : vector<16x1xf32>
    %51 = arith.mulf %46, %46 : vector<16x128xf32>
    %cst_22 = arith.constant dense<0.000000e+00> : vector<16xf32>
    %52 = vector.multi_reduction <add>, %51, %cst_22 [1] : vector<16x128xf32> to vector<16xf32>
    %53 = vector.shape_cast %52 : vector<16xf32> to vector<16x1xf32>
    %cst_23 = arith.constant 1.280000e+02 : f32
    %54 = vector.broadcast %cst_23 : f32 to vector<16x1xf32>
    %55 = arith.divf %53, %54 : vector<16x1xf32>
    %56 = vector.broadcast %50 : vector<16x1xf32> to vector<16x128xf32>
    %57 = arith.subf %46, %56 : vector<16x128xf32>
    %58 = arith.mulf %50, %50 : vector<16x1xf32>
    %59 = arith.subf %55, %58 : vector<16x1xf32>
    %cst_24 = arith.constant 9.99999996E-13 : f32
    %60 = vector.broadcast %cst_24 : f32 to vector<16x1xf32>
    %61 = arith.addf %59, %60 : vector<16x1xf32>
    %62 = math.rsqrt %61 : vector<16x1xf32>
    %63 = vector.broadcast %62 : vector<16x1xf32> to vector<16x128xf32>
    %64 = arith.mulf %57, %63 : vector<16x128xf32>
    %c0_25 = arith.constant 0 : index
    %c0_26 = arith.constant 0 : index
    %65 = vector.load %arg4[%c0_25, %c0_26] : memref<1x128xf32, #tpu.memory_space<vmem>>, vector<1x128xf32>
    %66 = vector.broadcast %65 : vector<1x128xf32> to vector<16x128xf32>
    %67 = arith.mulf %64, %66 : vector<16x128xf32>
    %c0_27 = arith.constant 0 : index
    %c0_28 = arith.constant 0 : index
    %68 = vector.load %arg5[%c0_27, %c0_28] : memref<1x128xf32, #tpu.memory_space<vmem>>, vector<1x128xf32>
    %69 = vector.broadcast %68 : vector<1x128xf32> to vector<16x128xf32>
    %70 = arith.addf %67, %69 : vector<16x128xf32>
    %71 = arith.truncf %70 : vector<16x128xf32> to vector<16x128xbf16>
    %c0_29 = arith.constant 0 : index
    %c0_30 = arith.constant 0 : index
    %72 = vector.load %arg6[%c0_29, %c0_30] : memref<16x128xbf16, #tpu.memory_space<vmem>>, vector<16x128xbf16>
    tpu.vector_store %arg6[%c0_29, %c0_30], %71 {strides = array<i32>} : memref<16x128xbf16, #tpu.memory_space<vmem>>, vector<16x128xbf16>,
    return
  }
  func.func @transform_0(%arg0: i32) -> (i32, i32) {
    %c0_i32 = arith.constant 0 : i32
    %c0_i32_0 = arith.constant 0 : i32
    return %arg0, %c0_i32 : i32, i32
  }
  func.func @transform_1(%arg0: i32) -> (i32, i32) {
    %c0_i32 = arith.constant 0 : i32
    %c0_i32_0 = arith.constant 0 : i32
    %c0_i32_1 = arith.constant 0 : i32
    return %c0_i32, %c0_i32_0 : i32, i32
  }
  func.func @transform_2(%arg0: i32) -> (i32, i32) {
    %c0_i32 = arith.constant 0 : i32
    %c0_i32_0 = arith.constant 0 : i32
    %c0_i32_1 = arith.constant 0 : i32
    return %c0_i32, %c0_i32_0 : i32, i32
  }
  func.func @transform_3(%arg0: i32) -> (i32, i32) {
    %c0_i32 = arith.constant 0 : i32
    %c0_i32_0 = arith.constant 0 : i32
    %c0_i32_1 = arith.constant 0 : i32
    return %c0_i32, %c0_i32_0 : i32, i32
  }
  func.func @transform_4(%arg0: i32) -> (i32, i32) {
    %c0_i32 = arith.constant 0 : i32
    %c0_i32_0 = arith.constant 0 : i32
    %c0_i32_1 = arith.constant 0 : i32
    return %c0_i32, %c0_i32_0 : i32, i32
  }
  func.func @transform_5(%arg0: i32) -> (i32, i32) {
    %c0_i32 = arith.constant 0 : i32
    %c0_i32_0 = arith.constant 0 : i32
    return %arg0, %c0_i32 : i32, i32
  }
}

</mosaic_0001>

<bundles_post_ra>
// kernel: tpu_custom_call.1
= control target key start
LH: loop header
LB: loop body
LE: loop exit
PB: predicated region body
PF: predicated region fallthrough
CT: control target
= control target key end

     0   :  { %10 = vsyncpa [#allocation3], 0  ;;  %s499_s0 = inlined_call_operand.hbm [shape: f32[16,128], index: 0, kind: input, shape index: {}]   ;;  %s500_s1 = inlined_call_operand.hbm [shape: bf16[128,128], index: 1, kind: input, shape index: {}]   ;;  %s501_s2 = inlined_call_operand.vmem [shape: f32[1,128], index: 2, kind: input, shape index: {}]   ;;  %s502_s3 = inlined_call_operand.vmem [shape: f32[1,128], index: 3, kind: input, shape index: {}]   ;;  %s503_s4 = inlined_call_operand.vmem [shape: f32[1,128], index: 4, kind: input, shape index: {}]   ;;  %s504_s5 = inlined_call_operand.hbm [shape: bf16[16,128], index: 5, kind: output, shape index: {}]  }
   0x1   :  { %11 = vsyncpa [#allocation6], 0 }
   0x2   :  { %12 = vsyncpa [#allocation4], 0  ;;  %s436_s18 = smov [#allocation2]  }
   0x3   :  { %s18_s19 = sshll.u32 %s436_s18, 4  ;;  %s19_s19 = int_to_ptr.vmem [resolvable:$true] %s18_s19 }
   0x4   :  { %s378_s20 = scalar_lea.vmem %s19_s19, 256  ;;  %p383_p1 = scmp.lt.s32.totalorder %s19_s19, %s19_s19 }
   0x5   :  { %p379_p0 = scmp.ne.s32.totalorder %s19_s19, %s378_s20  ;;  %p384_p2 = scmp.lt.s32.totalorder %s378_s20, %s378_s20 }
   0x7   :  { %p385_p3 = por %p384_p2, %p383_p1 }
   0x9   :  { %p386_p4 = pnand %p385_p3, %p379_p0 }
   0xb   :  { %389 = shalt.err (!%p386_p4)
}
   0xc   :  { %s437_s21 = smov 128   ;;  %s438_s22 = smov 8  }
   0xd   :  { %24 = dma.hbm_to_vmem [thread:$0]  %s499_s0, 256, %s19_s19, [#allocation3], %s437_s21, %s437_s21, %s438_s22  }
   0xe   :  { %s439_s25 = smov [#allocation5]  }
   0xf   :  { %s30_s26 = sshll.u32 %s439_s25, 4  ;;  %s31_s26 = int_to_ptr.vmem [resolvable:$true] %s30_s26 }
  0x10   :  { %s398_s27 = scalar_lea.vmem %s31_s26, 1024  ;;  %p403_p6 = scmp.lt.s32.totalorder %s31_s26, %s31_s26 }
  0x11   :  { %p399_p5 = scmp.ne.s32.totalorder %s31_s26, %s398_s27  ;;  %p404_p7 = scmp.lt.s32.totalorder %s398_s27, %s398_s27 }
  0x13   :  { %p405_p8 = por %p404_p7, %p403_p6 }
  0x15   :  { %p406_p9 = pnand %p405_p8, %p399_p5 }
  0x17   :  { %409 = shalt.err (!%p406_p9)
}
  0x18   :  { %s440_s28 = smov 64   ;;  %s441_s29 = smov 4  }
  0x19   :  { %36 = dma.hbm_to_vmem [thread:$0]  %s500_s1, 1024, %s31_s26, [#allocation6], %s440_s28, %s440_s28, %s441_s29  }
  0x1a   :  { %430 = dma.done.wait [#allocation3], 256  }
  0x1b   :  { %431 = vsyncadd [#allocation3], 4294967040 }
  0x1c   :  { %432 = dma.done.wait [#allocation6], 1024  }
  0x1d   :  { %433 = vsyncadd [#allocation6], 4294966272  ;;  %v442_v0 = vmov 0.0   ;;  %vm443_vm0 = vmmov 0   ;;  %v350_v1 = vld [vmem:[#allocation5 + $0x38] sm:$0xff]   ;;  %v351_v2 = vld [vmem:[#allocation5 + $0x30] sm:$0xff]  }
  0x1e   :  { %321 = vmatprep.subr.bf16.mxu0 %v442_v0  ;;  %337 = vmatprep.mubr.msk.bf16.mxu0 %vm443_vm0, %v442_v0  ;;  %v352_v3 = vld [vmem:[#allocation5 + $0x28] sm:$0xff]   ;;  %v353_v4 = vld [vmem:[#allocation5 + $0x20] sm:$0xff]   ;;  %v354_v5 = vld [vmem:[#allocation5 + $0x18] sm:$0xff]   ;;  %s444_s10 = smov [#allocation7]  }
  0x1f   :  { %322 = vmatpush3.bf16.msra.mxu0 %v350_v1  ;;  %v355_v6 = vld [vmem:[#allocation5 + $0x10] sm:$0xff]   ;;  %v356_v7 = vld [vmem:[#allocation5 + $0x8] sm:$0xff]   ;;  %v357_v8 = vld [vmem:[#allocation5] sm:$0xff]   ;;  %s279_s11 = sshll.u32 %s444_s10, 4  ;;  %s280_s11 = int_to_ptr.vmem [resolvable:$true] %s279_s11 }
  0x20   :  { %323 = vmatprep.subr.bf16.mxu0 %v442_v0  ;;  %v50_v9 = vld [vmem:[#allocation2] sm:$0xff]  ;;  %v51_v10 = vld [vmem:[#allocation2 + $0x8] sm:$0xff]  ;;  %s410_s12 = scalar_lea.vmem %s280_s11, 128  ;;  %p415_p11 = scmp.lt.s32.totalorder %s280_s11, %s280_s11 }
  0x21   :  { %v52_v11 = vpack.c.bf16 %v51_v10, %v50_v9  ;;  %v292_v12 = vld [vmem:[%s501_s2] ss:$0 sm:$0xff]  ;;  %p411_p10 = scmp.ne.s32.totalorder %s280_s11, %s410_s12  ;;  %p416_p12 = scmp.lt.s32.totalorder %s410_s12, %s410_s12 }
  0x23   :  { %324 = vmatpush3.bf16.msra.mxu0 %v351_v2  ;;  %p417_p13 = por %p416_p12, %p415_p11 }
  0x24   :  { %325 = vmatprep.subr.bf16.mxu0 %v442_v0 }
  0x25   :  { %p418_p0 = pnand %p417_p13, %p411_p10 }
  0x27   :  { %326 = vmatpush3.bf16.msra.mxu0 %v352_v3 }
  0x28   :  { %327 = vmatprep.subr.bf16.mxu0 %v442_v0 }
  0x2b   :  { %328 = vmatpush3.bf16.msra.mxu0 %v353_v4 }
  0x2c   :  { %329 = vmatprep.subr.bf16.mxu0 %v442_v0 }
  0x2f   :  { %330 = vmatpush3.bf16.msra.mxu0 %v354_v5 }
  0x30   :  { %331 = vmatprep.subr.bf16.mxu0 %v442_v0 }
  0x33   :  { %332 = vmatpush3.bf16.msra.mxu0 %v355_v6 }
  0x34   :  { %333 = vmatprep.subr.bf16.mxu0 %v442_v0 }
  0x37   :  { %334 = vmatpush3.bf16.msra.mxu0 %v356_v7 }
  0x38   :  { %335 = vmatprep.subr.bf16.mxu0 %v442_v0 }
  0x3b   :  { %336 = vmatpush3.bf16.msra.mxu0 %v357_v8 }
  0x3e   :  { %338 = vmatmul.mubr.bf16.vlgmr.msra.gmra.mxu0 %v52_v11 }
  0xfe   :  { %v158_v13 = vpop.f32.mrf.mxu0 }
  0xff   :  { %v159_v14 = vadd.f32 %v292_v12, %v158_v13 }
 0x100   :  { %v339_v15 = vpop.f32.mrf.mxu0 }
 0x101   :  { %v167_v16 = vmul.f32 0.70710677, %v159_v14  ;;  %v165_v61 = vmul.f32 0.5, %v159_v14 }
 0x102   :  { %v161_v17 = vpop.f32.mrf.mxu0 }
 0x103   :  { %v169_v18 = vand.u32 2147483647, %v167_v16  ;;  %v162_v19 = vadd.f32 %v292_v12, %v161_v17  ;;  %vm209_vm1 = vcmp.lt.f32.partialorder %v167_v16, 0.0 }
 0x104   :  { %v340_v20 = vpop.f32.mrf.mxu0 }
 0x105   :  { %v171_v21 = vmul.f32 0.3275911, %v169_v18  ;;  %v168_v22 = vmul.f32 0.70710677, %v162_v19  ;;  %v197_v27 = vmul.f32 %v169_v18, %v169_v18  ;;  %v166_v2 = vmul.f32 0.5, %v162_v19 }
 0x107   :  { %v173_v23 = vadd.f32 1.0, %v171_v21  ;;  %v170_v24 = vand.u32 2147483647, %v168_v22  ;;  %v199_v28 = vsub.f32 0.0, %v197_v27  ;;  %vm210_vm2 = vcmp.lt.f32.partialorder %v168_v22, 0.0 }
 0x109   :  { %358 = vrcp.f32 %v173_v23  ;;  %v172_v25 = vmul.f32 0.3275911, %v170_v24  ;;  %v198_v29 = vmul.f32 %v170_v24, %v170_v24  ;;  %v201_v31 = vmul.f32 1.442695, %v199_v28  ;;  %v301_v24 = vld [vmem:[%s502_s3] ss:$0 sm:$0xff] }
 0x10b   :  { %v174_v26 = vadd.f32 1.0, %v172_v25  ;;  %v200_v32 = vsub.f32 0.0, %v198_v29  ;;  %v302_v29 = vld [vmem:[%s503_s4] ss:$0 sm:$0xff] }
 0x10d   :  { %360 = vrcp.f32 %v174_v26  ;;  %v203_v36 = vmul.f32 1.442695, %v200_v32 }
 0x10e   :  { %362 = vpow2.f32 %v201_v31 }
 0x10f   :  { %364 = vpow2.f32 %v203_v36 }
 0x116   :  { %v359_v30 = vpop.eup %358 }
 0x117   :  { %v179_v33 = vmul.f32 1.0614054, %v359_v30 }
 0x119   :  { %v181_v34 = vadd.f32 -1.4531521, %v179_v33 }
 0x11a   :  { %v361_v35 = vpop.eup %360 }
 0x11b   :  { %v183_v37 = vmul.f32 %v359_v30, %v181_v34  ;;  %v180_v38 = vmul.f32 1.0614054, %v361_v35  ;;  %v363_v51 = vpop.eup %362 }
 0x11c   :  { %v365_v56 = vpop.eup %364 }
 0x11d   :  { %v185_v39 = vadd.f32 1.4214138, %v183_v37  ;;  %v182_v40 = vadd.f32 -1.4531521, %v180_v38 }
 0x11f   :  { %v187_v41 = vmul.f32 %v359_v30, %v185_v39  ;;  %v184_v42 = vmul.f32 %v361_v35, %v182_v40 }
 0x121   :  { %v189_v43 = vadd.f32 -0.28449672, %v187_v41  ;;  %v186_v44 = vadd.f32 1.4214138, %v184_v42 }
 0x123   :  { %v191_v45 = vmul.f32 %v359_v30, %v189_v43  ;;  %v188_v46 = vmul.f32 %v361_v35, %v186_v44 }
 0x125   :  { %v193_v47 = vadd.f32 0.2548296, %v191_v45  ;;  %v190_v48 = vadd.f32 -0.28449672, %v188_v46 }
 0x127   :  { %v195_v49 = vmul.f32 %v359_v30, %v193_v47  ;;  %v192_v50 = vmul.f32 %v361_v35, %v190_v48 }
 0x129   :  { %v205_v52 = vmul.f32 %v363_v51, %v195_v49  ;;  %v194_v53 = vadd.f32 0.2548296, %v192_v50 }
 0x12b   :  { %v207_v54 = vsub.f32 1.0, %v205_v52  ;;  %v196_v55 = vmul.f32 %v361_v35, %v194_v53 }
 0x12d   :  { %v211_v57 = vsub.f32 0.0, %v207_v54  ;;  %v206_v58 = vmul.f32 %v365_v56, %v196_v55 }
 0x12f   :  { %v213_v59 = vsel %vm209_vm1, %v211_v57, %v207_v54  ;;  %v208_v60 = vsub.f32 1.0, %v206_v58 }
 0x130   :  { %v215_v62 = vadd.f32 1.0, %v213_v59 }
 0x131   :  { %v212_v63 = vsub.f32 0.0, %v208_v60 }
 0x132   :  { %v217_v0 = vmul.f32 %v215_v62, %v165_v61 }
 0x133   :  { %v214_v1 = vsel %vm210_vm2, %v212_v63, %v208_v60 }
 0x134   :  { %219 = vadd.xlane.f32.xlu0 %v217_v0  ;;  %v226_v3 = vmul.f32 %v217_v0, %v217_v0  ;;  %v216_v4 = vadd.f32 1.0, %v214_v1 }
 0x136   :  { %228 = vadd.xlane.f32.xlu1 %v226_v3  ;;  %v218_v5 = vmul.f32 %v216_v4, %v166_v2 }
 0x138   :  { %221 = vadd.xlane.f32.xlu0 %v218_v5  ;;  %v227_v6 = vmul.f32 %v218_v5, %v218_v5 }
 0x13a   :  { %230 = vadd.xlane.f32.xlu1 %v227_v6 }
 0x1bd   :  { %v220_v7 = vpop.xlane.xlu0 %219 }
 0x1be   :  { %v224_v8 = vmul.f32 0.0078125, %v220_v7 }
 0x1bf   :  { %v229_v9 = vpop.xlane.xlu1 %228 }
 0x1c0   :  { %v236_v10 = vmul.f32 %v224_v8, %v224_v8  ;;  %v232_v11 = vmul.f32 0.0078125, %v229_v9  ;;  %v234_v21 = vsub.f32 %v217_v0, %v224_v8 }
 0x1c1   :  { %v222_v12 = vpop.xlane.xlu0 %221 }
 0x1c2   :  { %v238_v13 = vsub.f32 %v232_v11, %v236_v10  ;;  %v225_v14 = vmul.f32 0.0078125, %v222_v12 }
 0x1c3   :  { %v231_v15 = vpop.xlane.xlu1 %230 }
 0x1c4   :  { %v240_v16 = vadd.f32 1e-12, %v238_v13  ;;  %v237_v17 = vmul.f32 %v225_v14, %v225_v14  ;;  %v233_v18 = vmul.f32 0.0078125, %v231_v15  ;;  %v235_v25 = vsub.f32 %v218_v5, %v225_v14 }
 0x1c6   :  { %366 = vrsqrt.f32 %v240_v16  ;;  %v239_v19 = vsub.f32 %v233_v18, %v237_v17 }
 0x1c8   :  { %v241_v20 = vadd.f32 1e-12, %v239_v19 }
 0x1ca   :  { %368 = vrsqrt.f32 %v241_v20 }
 0x1d3   :  { %v367_v22 = vpop.eup %366 }
 0x1d4   :  { %v244_v23 = vmul.f32 %v367_v22, %v234_v21 }
 0x1d6   :  { %v253_v28 = vmul.f32 %v301_v24, %v244_v23 }
 0x1d7   :  { %v369_v26 = vpop.eup %368 }
 0x1d8   :  { %v245_v27 = vmul.f32 %v369_v26, %v235_v25  ;;  %v262_v31 = vadd.f32 %v302_v29, %v253_v28 }
 0x1da   :  { %v254_v30 = vmul.f32 %v301_v24, %v245_v27 }
 0x1dc   :  { %v263_v32 = vadd.f32 %v302_v29, %v254_v30 }
 0x1de   :  { %v310_v33 = vpack.c.bf16 %v263_v32, %v262_v31 }
 0x1e0   :  { %311 = vst [vmem:[#allocation7] sm:$0xff] %v310_v33  }
 0x1e1   :  { %421 = shalt.err (!%p418_p0)
}
 0x1e2   :  { %285 = dma.vmem_to_hbm [thread:$0]  %s280_s11, 128, %s504_s5, [#allocation4], %s440_s28, %s440_s28, %s441_s29  }
 0x1e3   :  { %434 = dma.done.wait [#allocation4], 128  }
 0x1e4   :  { %435 = vsyncadd [#allocation4], 4294967168 }
 0x1e5   :  { %289 = vsyncpa [#allocation3], 1 }
 0x1e6   :  { %290 = vsyncpa [#allocation6], 1 }
 0x1e7   :  { %291 = vsyncpa [#allocation4], 1 }

</bundles_post_ra>
